<compile_context>
chip_gen: v6e
topology: v6e:2x2x1
jax: 0.10.0
libtpu: 0.0.40
codegen_flags: <defaults>
</compile_context>

<pallas_src>
import jax
import jax.numpy as jnp
from jax.experimental import pallas as pl
from jax.experimental.pallas import tpu as pltpu

HIDDEN = 128


def _round_up(n, m):
    return ((n + m - 1) // m) * m


def mlp_kernel(x_ref, w1_ref, b1_ref, w2_ref, b2_ref, o_ref, acc_ref):
    k = pl.program_id(1)

    @pl.when(k == 0)
    def _():
        acc_ref[...] = jnp.zeros_like(acc_ref)

    # fc1 partial product: (TB, TK) bf16 @ (TK, 128) bf16 -> f32 accumulate.
    acc_ref[...] += jnp.dot(x_ref[...], w1_ref[...],
                            preferred_element_type=jnp.float32)

    @pl.when(k == pl.num_programs(1) - 1)
    def _():
        h1 = jnp.maximum(acc_ref[...] + b1_ref[...], 0.0)
        # fc2: feed the MXU in the streaming dtype again; accumulate in f32.
        h1 = h1.astype(w2_ref.dtype)
        h2 = jnp.dot(h1, w2_ref[...], preferred_element_type=jnp.float32)
        o_ref[...] = jnp.maximum(h2 + b2_ref[...], 0.0).astype(o_ref.dtype)


def _build_call(tile_b, tile_k, B_pad, K_pad, out_dtype, vmem_limit,
                single_buffer_weights):
    # b1 / W2 / b2 have constant index_maps -> fetched once; the second
    # pipeline buffer is pure VMEM waste, so request single-buffering for them.
    resident = (
        dict(pipeline_mode=pl.Buffered(1)) if single_buffer_weights else {}
    )
    return pl.pallas_call(
        mlp_kernel,
        out_shape=jax.ShapeDtypeStruct((B_pad, HIDDEN), out_dtype),
        grid_spec=pltpu.PrefetchScalarGridSpec(
            num_scalar_prefetch=0,
            grid=(B_pad // tile_b, K_pad // tile_k),
            in_specs=[
                pl.BlockSpec((tile_b, tile_k), lambda i, k: (i, k)),   # x tile
                pl.BlockSpec((tile_k, HIDDEN), lambda i, k: (k, 0)),   # W1 tile
                pl.BlockSpec((1, HIDDEN), lambda i, k: (0, 0), **resident),       # b1
                pl.BlockSpec((HIDDEN, HIDDEN), lambda i, k: (0, 0), **resident),  # W2
                pl.BlockSpec((1, HIDDEN), lambda i, k: (0, 0), **resident),       # b2
            ],
            out_specs=pl.BlockSpec((tile_b, HIDDEN), lambda i, k: (i, 0)),
            scratch_shapes=[pltpu.VMEM((tile_b, HIDDEN), jnp.float32)],
        ),
        compiler_params=pltpu.CompilerParams(
            dimension_semantics=("parallel", "arbitrary"),
            vmem_limit_bytes=vmem_limit,
        ),
    )


def mlp_forward(x, w1, b1, w2, b2, *, tile_b=512, tile_k_max=2048,
                compute_dtype=jnp.bfloat16):
    """x: (B, in_dim); w1: (in_dim, 128); b1: (1,128)/(128,); w2: (128,128); b2: (1,128)/(128,)."""
    B, in_dim = x.shape
    out_dtype = jnp.float32

    # Lane-dense contraction dim; zero-padding x / W1 keeps x @ W1 exact.
    K_128 = _round_up(in_dim, 128)
    tile_k = min(K_128, _round_up(tile_k_max, 128))
    K_pad = _round_up(in_dim, tile_k)
    # Large batch tile (fills MXU rows, amortizes ~0.35us/step grid overhead),
    # clamped for small inputs; keep it a multiple of 8 sublanes.
    tile_b = max(8, _round_up(min(tile_b, _round_up(B, 8)), 8))
    B_pad = _round_up(B, tile_b)

    x_p = jnp.pad(x.astype(compute_dtype),
                  ((0, B_pad - B), (0, K_pad - in_dim)))
    w1_p = jnp.pad(w1.astype(compute_dtype), ((0, K_pad - in_dim), (0, 0)))
    w2_c = w2.astype(compute_dtype)
    b1_c = jnp.asarray(b1, jnp.float32).reshape(1, HIDDEN)
    b2_c = jnp.asarray(b2, jnp.float32).reshape(1, HIDDEN)

    # Scoped-VMEM budget: x + W1 double-buffered, resident W2/biases, f32
    # output double-buffered, f32 accumulator scratch; clamp to [32, 100] MiB.
    isz = jnp.dtype(compute_dtype).itemsize
    est = (2 * tile_b * tile_k * isz          # x tiles
           + 2 * tile_k * HIDDEN * isz        # W1 tiles
           + HIDDEN * HIDDEN * isz            # W2
           + 4 * HIDDEN * 4                   # biases
           + 2 * tile_b * HIDDEN * 4          # output tiles
           + tile_b * HIDDEN * 4)             # accumulator scratch
    vmem_limit = int(min(max(2 * est, 32 * 1024 * 1024), 100 * 1024 * 1024))

    args = (x_p, w1_p, b1_c, w2_c, b2_c)
    try:
        out = _build_call(tile_b, tile_k, B_pad, K_pad, out_dtype, vmem_limit,
                          single_buffer_weights=True)(*args)
        out = jax.block_until_ready(out)
    except Exception:
        # This jax version rejected pipeline_mode=pl.Buffered(1); fall back to
        # default double-buffering of the (small) resident operands.
        out = _build_call(tile_b, tile_k, B_pad, K_pad, out_dtype, vmem_limit,
                          single_buffer_weights=False)(*args)
    return out[:B]


def init_params(key, in_dim):
    # Deterministic init mimicking nn.Linear default (uniform(-1/sqrt(fan_in), +)).
    k1, k2, k3, k4 = jax.random.split(key, 4)
    bound1 = 1.0 / (in_dim ** 0.5)
    bound2 = 1.0 / (HIDDEN ** 0.5)
    w1 = jax.random.uniform(k1, (in_dim, HIDDEN), jnp.float32, -bound1, bound1)
    b1 = jax.random.uniform(k2, (1, HIDDEN), jnp.float32, -bound1, bound1)
    w2 = jax.random.uniform(k3, (HIDDEN, HIDDEN), jnp.float32, -bound2, bound2)
    b2 = jax.random.uniform(k4, (1, HIDDEN), jnp.float32, -bound2, bound2)
    return w1, b1, w2, b2


def reference_forward(x, w1, b1, w2, b2):
    h1 = jnp.maximum(x @ w1 + b1, 0.0)
    h2 = jnp.maximum(h1 @ w2 + b2, 0.0)
    return h2


if __name__ == "__main__":
    key = jax.random.PRNGKey(0)
    kx1, kx2, kx3, kp1, kp2, kp3 = jax.random.split(key, 6)

    # 1) Small shape consistent with the module (MLP encoder on (batch, in_dim)).
    B1, in_dim1 = 8, 32
    x1 = jax.random.normal(kx1, (B1, in_dim1), dtype=jnp.float32)
    p1 = init_params(kp1, in_dim1)
    out1 = jax.block_until_ready(mlp_forward(x1, *p1))
    ref1 = reference_forward(x1, *p1)
    assert out1.shape == (B1, HIDDEN)
    # bf16 streaming -> tolerance loosened vs. the pure-f32 reference.
    assert jnp.allclose(out1, ref1, atol=5e-2, rtol=5e-2), float(
        jnp.max(jnp.abs(out1 - ref1)))

    # 2) Batch padding (600 -> 1024), multi-step parallel batch grid, and
    #    contraction-dim padding (200 -> 256).
    B2, in_dim2 = 600, 200
    x2 = jax.random.normal(kx2, (B2, in_dim2), dtype=jnp.float32)
    p2 = init_params(kp2, in_dim2)
    out2 = jax.block_until_ready(mlp_forward(x2, *p2))
    ref2 = reference_forward(x2, *p2)
    assert out2.shape == (B2, HIDDEN)
    assert jnp.allclose(out2, ref2, atol=5e-2, rtol=5e-2), float(
        jnp.max(jnp.abs(out2 - ref2)))

    # 3) Force multiple K grid steps (tile_k=128, in_dim=300 -> 3 K tiles) to
    #    exercise the f32 accumulator / pl.when init-finalize path.
    B3, in_dim3 = 64, 300
    x3 = jax.random.normal(kx3, (B3, in_dim3), dtype=jnp.float32)
    p3 = init_params(kp3, in_dim3)
    out3 = jax.block_until_ready(mlp_forward(x3, *p3, tile_k_max=128))
    ref3 = reference_forward(x3, *p3)
    assert out3.shape == (B3, HIDDEN)
    assert jnp.allclose(out3, ref3, atol=5e-2, rtol=5e-2), float(
        jnp.max(jnp.abs(out3 - ref3)))

    print("KERNEL_OK")
</pallas_src>

<mosaic_0001>
module attributes {stable_mosaic.version = 11 : i64} {
  func.func @mlp_kernel(%arg0: i32, %arg1: i32, %arg2: memref<8x128xbf16, #tpu.memory_space<vmem>>, %arg3: memref<128x128xbf16, #tpu.memory_space<vmem>>, %arg4: memref<1x128xf32, #tpu.memory_space<vmem>>, %arg5: memref<128x128xbf16, #tpu.memory_space<vmem>>, %arg6: memref<1x128xf32, #tpu.memory_space<vmem>>, %arg7: memref<8x128xf32, #tpu.memory_space<vmem>>, %arg8: memref<8x128xf32, #tpu.memory_space<vmem>>) attributes {dimension_semantics = [#tpu.dimension_semantics<parallel>, #tpu.dimension_semantics<arbitrary>], iteration_bounds = array<i64: 1, 1>, scalar_prefetch = 0 : i64, scratch_operands = 1 : i64, tpu.core_type = #tpu.core_type<tc>, window_params = [{transform_indices = @transform_0, window_bounds = array<i64: 8, 128>}, {transform_indices = @transform_1, window_bounds = array<i64: 128, 128>}, {pipeline_mode = #tpu.pipeline_mode<synchronous>, transform_indices = @transform_2, window_bounds = array<i64: 1, 128>}, {pipeline_mode = #tpu.pipeline_mode<synchronous>, transform_indices = @transform_3, window_bounds = array<i64: 128, 128>}, {pipeline_mode = #tpu.pipeline_mode<synchronous>, transform_indices = @transform_4, window_bounds = array<i64: 1, 128>}, {transform_indices = @transform_5, window_bounds = array<i64: 8, 128>}]} {
    %c0_i32 = arith.constant 0 : i32
    %0 = arith.cmpi eq, %arg1, %c0_i32 : i32
    %1 = arith.extui %0 : i1 to i32
    %c0_i32_0 = arith.constant 0 : i32
    %2 = arith.cmpi ne, %1, %c0_i32_0 : i32
    scf.if %2 {
      %cst_10 = arith.constant 0.000000e+00 : f32
      %12 = vector.broadcast %cst_10 : f32 to vector<8x128xf32>
      %c0_11 = arith.constant 0 : index
      %c0_12 = arith.constant 0 : index
      %13 = vector.load %arg8[%c0_11, %c0_12] : memref<8x128xf32, #tpu.memory_space<vmem>>, vector<8x128xf32>
      tpu.vector_store %arg8[%c0_11, %c0_12], %12 {strides = array<i32>} : memref<8x128xf32, #tpu.memory_space<vmem>>, vector<8x128xf32>,
    } else {
    }
    %c0 = arith.constant 0 : index
    %c0_1 = arith.constant 0 : index
    %3 = vector.load %arg8[%c0, %c0_1] : memref<8x128xf32, #tpu.memory_space<vmem>>, vector<8x128xf32>
    %c0_2 = arith.constant 0 : index
    %c0_3 = arith.constant 0 : index
    %4 = vector.load %arg2[%c0_2, %c0_3] : memref<8x128xbf16, #tpu.memory_space<vmem>>, vector<8x128xbf16>
    %c0_4 = arith.constant 0 : index
    %c0_5 = arith.constant 0 : index
    %5 = vector.load %arg3[%c0_4, %c0_5] : memref<128x128xbf16, #tpu.memory_space<vmem>>, vector<128x128xbf16>
    %cst = arith.constant dense<0.000000e+00> : vector<8x128xf32>
    %6 = tpu.matmul %4, %5, %cst {dimension_numbers = #tpu.dot_dimension_numbers<[1], [0], [0], [1], [0, 0, 1, 1], [], []>} : vector<8x128xbf16>, vector<128x128xbf16>, vector<8x128xf32> -> vector<8x128xf32>
    %7 = arith.addf %3, %6 : vector<8x128xf32>
    %c0_6 = arith.constant 0 : index
    %c0_7 = arith.constant 0 : index
    %8 = vector.load %arg8[%c0_6, %c0_7] : memref<8x128xf32, #tpu.memory_space<vmem>>, vector<8x128xf32>
    tpu.vector_store %arg8[%c0_6, %c0_7], %7 {strides = array<i32>} : memref<8x128xf32, #tpu.memory_space<vmem>>, vector<8x128xf32>,
    %c0_i32_8 = arith.constant 0 : i32
    %9 = arith.cmpi eq, %arg1, %c0_i32_8 : i32
    %10 = arith.extui %9 : i1 to i32
    %c0_i32_9 = arith.constant 0 : i32
    %11 = arith.cmpi ne, %10, %c0_i32_9 : i32
    scf.if %11 {
      %c0_10 = arith.constant 0 : index
      %c0_11 = arith.constant 0 : index
      %12 = vector.load %arg8[%c0_10, %c0_11] : memref<8x128xf32, #tpu.memory_space<vmem>>, vector<8x128xf32>
      %c0_12 = arith.constant 0 : index
      %c0_13 = arith.constant 0 : index
      %13 = vector.load %arg4[%c0_12, %c0_13] : memref<1x128xf32, #tpu.memory_space<vmem>>, vector<1x128xf32>
      %14 = vector.broadcast %13 : vector<1x128xf32> to vector<8x128xf32>
      %15 = arith.addf %12, %14 : vector<8x128xf32>
      %cst_14 = arith.constant 0.000000e+00 : f32
      %16 = vector.broadcast %cst_14 : f32 to vector<8x128xf32>
      %17 = arith.maximumf %15, %16 : vector<8x128xf32>
      %18 = arith.truncf %17 : vector<8x128xf32> to vector<8x128xbf16>
      %c0_15 = arith.constant 0 : index
      %c0_16 = arith.constant 0 : index
      %19 = vector.load %arg5[%c0_15, %c0_16] : memref<128x128xbf16, #tpu.memory_space<vmem>>, vector<128x128xbf16>
      %cst_17 = arith.constant dense<0.000000e+00> : vector<8x128xf32>
      %20 = tpu.matmul %18, %19, %cst_17 {dimension_numbers = #tpu.dot_dimension_numbers<[1], [0], [0], [1], [0, 0, 1, 1], [], []>} : vector<8x128xbf16>, vector<128x128xbf16>, vector<8x128xf32> -> vector<8x128xf32>
      %c0_18 = arith.constant 0 : index
      %c0_19 = arith.constant 0 : index
      %21 = vector.load %arg6[%c0_18, %c0_19] : memref<1x128xf32, #tpu.memory_space<vmem>>, vector<1x128xf32>
      %22 = vector.broadcast %21 : vector<1x128xf32> to vector<8x128xf32>
      %23 = arith.addf %20, %22 : vector<8x128xf32>
      %cst_20 = arith.constant 0.000000e+00 : f32
      %24 = vector.broadcast %cst_20 : f32 to vector<8x128xf32>
      %25 = arith.maximumf %23, %24 : vector<8x128xf32>
      %c0_21 = arith.constant 0 : index
      %c0_22 = arith.constant 0 : index
      %26 = vector.load %arg7[%c0_21, %c0_22] : memref<8x128xf32, #tpu.memory_space<vmem>>, vector<8x128xf32>
      tpu.vector_store %arg7[%c0_21, %c0_22], %25 {strides = array<i32>} : memref<8x128xf32, #tpu.memory_space<vmem>>, vector<8x128xf32>,
    } else {
    }
    return
  }
  func.func @transform_0(%arg0: i32, %arg1: i32) -> (i32, i32) {
    %c0_i32 = arith.constant 0 : i32
    return %arg0, %arg1 : i32, i32
  }
  func.func @transform_1(%arg0: i32, %arg1: i32) -> (i32, i32) {
    %c0_i32 = arith.constant 0 : i32
    %c0_i32_0 = arith.constant 0 : i32
    return %arg1, %c0_i32 : i32, i32
  }
  func.func @transform_2(%arg0: i32, %arg1: i32) -> (i32, i32) {
    %c0_i32 = arith.constant 0 : i32
    %c0_i32_0 = arith.constant 0 : i32
    %c0_i32_1 = arith.constant 0 : i32
    return %c0_i32, %c0_i32_0 : i32, i32
  }
  func.func @transform_3(%arg0: i32, %arg1: i32) -> (i32, i32) {
    %c0_i32 = arith.constant 0 : i32
    %c0_i32_0 = arith.constant 0 : i32
    %c0_i32_1 = arith.constant 0 : i32
    return %c0_i32, %c0_i32_0 : i32, i32
  }
  func.func @transform_4(%arg0: i32, %arg1: i32) -> (i32, i32) {
    %c0_i32 = arith.constant 0 : i32
    %c0_i32_0 = arith.constant 0 : i32
    %c0_i32_1 = arith.constant 0 : i32
    return %c0_i32, %c0_i32_0 : i32, i32
  }
  func.func @transform_5(%arg0: i32, %arg1: i32) -> (i32, i32) {
    %c0_i32 = arith.constant 0 : i32
    %c0_i32_0 = arith.constant 0 : i32
    return %arg0, %c0_i32 : i32, i32
  }
}

module attributes {stable_mosaic.version = 11 : i64} {
  func.func @mlp_kernel(%arg0: i32, %arg1: i32, %arg2: memref<8x128xbf16, #tpu.memory_space<vmem>>, %arg3: memref<128x128xbf16, #tpu.memory_space<vmem>>, %arg4: memref<1x128xf32, #tpu.memory_space<vmem>>, %arg5: memref<128x128xbf16, #tpu.memory_space<vmem>>, %arg6: memref<1x128xf32, #tpu.memory_space<vmem>>, %arg7: memref<8x128xf32, #tpu.memory_space<vmem>>, %arg8: memref<8x128xf32, #tpu.memory_space<vmem>>) attributes {dimension_semantics = [#tpu.dimension_semantics<parallel>, #tpu.dimension_semantics<arbitrary>], iteration_bounds = array<i64: 1, 1>, scalar_prefetch = 0 : i64, scratch_operands = 1 : i64, tpu.core_type = #tpu.core_type<tc>, window_params = [{transform_indices = @transform_0, window_bounds = array<i64: 8, 128>}, {transform_indices = @transform_1, window_bounds = array<i64: 128, 128>}, {pipeline_mode = #tpu.pipeline_mode<synchronous>, transform_indices = @transform_2, window_bounds = array<i64: 1, 128>}, {pipeline_mode = #tpu.pipeline_mode<synchronous>, transform_indices = @transform_3, window_bounds = array<i64: 128, 128>}, {pipeline_mode = #tpu.pipeline_mode<synchronous>, transform_indices = @transform_4, window_bounds = array<i64: 1, 128>}, {transform_indices = @transform_5, window_bounds = array<i64: 8, 128>}]} {
    %c0_i32 = arith.constant 0 : i32
    %0 = arith.cmpi eq, %arg1, %c0_i32 : i32
    %1 = arith.extui %0 : i1 to i32
    %c0_i32_0 = arith.constant 0 : i32
    %2 = arith.cmpi ne, %1, %c0_i32_0 : i32
    scf.if %2 {
      %cst_10 = arith.constant 0.000000e+00 : f32
      %12 = vector.broadcast %cst_10 : f32 to vector<8x128xf32>
      %c0_11 = arith.constant 0 : index
      %c0_12 = arith.constant 0 : index
      %13 = vector.load %arg8[%c0_11, %c0_12] : memref<8x128xf32, #tpu.memory_space<vmem>>, vector<8x128xf32>
      tpu.vector_store %arg8[%c0_11, %c0_12], %12 {strides = array<i32>} : memref<8x128xf32, #tpu.memory_space<vmem>>, vector<8x128xf32>,
    } else {
    }
    %c0 = arith.constant 0 : index
    %c0_1 = arith.constant 0 : index
    %3 = vector.load %arg8[%c0, %c0_1] : memref<8x128xf32, #tpu.memory_space<vmem>>, vector<8x128xf32>
    %c0_2 = arith.constant 0 : index
    %c0_3 = arith.constant 0 : index
    %4 = vector.load %arg2[%c0_2, %c0_3] : memref<8x128xbf16, #tpu.memory_space<vmem>>, vector<8x128xbf16>
    %c0_4 = arith.constant 0 : index
    %c0_5 = arith.constant 0 : index
    %5 = vector.load %arg3[%c0_4, %c0_5] : memref<128x128xbf16, #tpu.memory_space<vmem>>, vector<128x128xbf16>
    %cst = arith.constant dense<0.000000e+00> : vector<8x128xf32>
    %6 = tpu.matmul %4, %5, %cst {dimension_numbers = #tpu.dot_dimension_numbers<[1], [0], [0], [1], [0, 0, 1, 1], [], []>} : vector<8x128xbf16>, vector<128x128xbf16>, vector<8x128xf32> -> vector<8x128xf32>
    %7 = arith.addf %3, %6 : vector<8x128xf32>
    %c0_6 = arith.constant 0 : index
    %c0_7 = arith.constant 0 : index
    %8 = vector.load %arg8[%c0_6, %c0_7] : memref<8x128xf32, #tpu.memory_space<vmem>>, vector<8x128xf32>
    tpu.vector_store %arg8[%c0_6, %c0_7], %7 {strides = array<i32>} : memref<8x128xf32, #tpu.memory_space<vmem>>, vector<8x128xf32>,
    %c0_i32_8 = arith.constant 0 : i32
    %9 = arith.cmpi eq, %arg1, %c0_i32_8 : i32
    %10 = arith.extui %9 : i1 to i32
    %c0_i32_9 = arith.constant 0 : i32
    %11 = arith.cmpi ne, %10, %c0_i32_9 : i32
    scf.if %11 {
      %c0_10 = arith.constant 0 : index
      %c0_11 = arith.constant 0 : index
      %12 = vector.load %arg8[%c0_10, %c0_11] : memref<8x128xf32, #tpu.memory_space<vmem>>, vector<8x128xf32>
      %c0_12 = arith.constant 0 : index
      %c0_13 = arith.constant 0 : index
      %13 = vector.load %arg4[%c0_12, %c0_13] : memref<1x128xf32, #tpu.memory_space<vmem>>, vector<1x128xf32>
      %14 = vector.broadcast %13 : vector<1x128xf32> to vector<8x128xf32>
      %15 = arith.addf %12, %14 : vector<8x128xf32>
      %cst_14 = arith.constant 0.000000e+00 : f32
      %16 = vector.broadcast %cst_14 : f32 to vector<8x128xf32>
      %17 = arith.maximumf %15, %16 : vector<8x128xf32>
      %18 = arith.truncf %17 : vector<8x128xf32> to vector<8x128xbf16>
      %c0_15 = arith.constant 0 : index
      %c0_16 = arith.constant 0 : index
      %19 = vector.load %arg5[%c0_15, %c0_16] : memref<128x128xbf16, #tpu.memory_space<vmem>>, vector<128x128xbf16>
      %cst_17 = arith.constant dense<0.000000e+00> : vector<8x128xf32>
      %20 = tpu.matmul %18, %19, %cst_17 {dimension_numbers = #tpu.dot_dimension_numbers<[1], [0], [0], [1], [0, 0, 1, 1], [], []>} : vector<8x128xbf16>, vector<128x128xbf16>, vector<8x128xf32> -> vector<8x128xf32>
      %c0_18 = arith.constant 0 : index
      %c0_19 = arith.constant 0 : index
      %21 = vector.load %arg6[%c0_18, %c0_19] : memref<1x128xf32, #tpu.memory_space<vmem>>, vector<1x128xf32>
      %22 = vector.broadcast %21 : vector<1x128xf32> to vector<8x128xf32>
      %23 = arith.addf %20, %22 : vector<8x128xf32>
      %cst_20 = arith.constant 0.000000e+00 : f32
      %24 = vector.broadcast %cst_20 : f32 to vector<8x128xf32>
      %25 = arith.maximumf %23, %24 : vector<8x128xf32>
      %c0_21 = arith.constant 0 : index
      %c0_22 = arith.constant 0 : index
      %26 = vector.load %arg7[%c0_21, %c0_22] : memref<8x128xf32, #tpu.memory_space<vmem>>, vector<8x128xf32>
      tpu.vector_store %arg7[%c0_21, %c0_22], %25 {strides = array<i32>} : memref<8x128xf32, #tpu.memory_space<vmem>>, vector<8x128xf32>,
    } else {
    }
    return
  }
  func.func @transform_0(%arg0: i32, %arg1: i32) -> (i32, i32) {
    %c0_i32 = arith.constant 0 : i32
    return %arg0, %arg1 : i32, i32
  }
  func.func @transform_1(%arg0: i32, %arg1: i32) -> (i32, i32) {
    %c0_i32 = arith.constant 0 : i32
    %c0_i32_0 = arith.constant 0 : i32
    return %arg1, %c0_i32 : i32, i32
  }
  func.func @transform_2(%arg0: i32, %arg1: i32) -> (i32, i32) {
    %c0_i32 = arith.constant 0 : i32
    %c0_i32_0 = arith.constant 0 : i32
    %c0_i32_1 = arith.constant 0 : i32
    return %c0_i32, %c0_i32_0 : i32, i32
  }
  func.func @transform_3(%arg0: i32, %arg1: i32) -> (i32, i32) {
    %c0_i32 = arith.constant 0 : i32
    %c0_i32_0 = arith.constant 0 : i32
    %c0_i32_1 = arith.constant 0 : i32
    return %c0_i32, %c0_i32_0 : i32, i32
  }
  func.func @transform_4(%arg0: i32, %arg1: i32) -> (i32, i32) {
    %c0_i32 = arith.constant 0 : i32
    %c0_i32_0 = arith.constant 0 : i32
    %c0_i32_1 = arith.constant 0 : i32
    return %c0_i32, %c0_i32_0 : i32, i32
  }
  func.func @transform_5(%arg0: i32, %arg1: i32) -> (i32, i32) {
    %c0_i32 = arith.constant 0 : i32
    %c0_i32_0 = arith.constant 0 : i32
    return %arg0, %c0_i32 : i32, i32
  }
}

</mosaic_0001>

<bundles_post_ra>
// kernel: tpu_custom_call.1
= control target key start
LH: loop header
LB: loop body
LE: loop exit
PB: predicated region body
PF: predicated region fallthrough
CT: control target
= control target key end

     0   :  { %10 = vsyncpa [#allocation4], 0  ;;  %s559_s0 = inlined_call_operand.hbm [shape: bf16[8,128], index: 0, kind: input, shape index: {}]   ;;  %s560_s1 = inlined_call_operand.hbm [shape: bf16[128,128], index: 1, kind: input, shape index: {}]   ;;  %s561_s2 = inlined_call_operand.vmem [shape: f32[1,128], index: 2, kind: input, shape index: {}]   ;;  %s562_s3 = inlined_call_operand.hbm [shape: bf16[128,128], index: 3, kind: input, shape index: {}]   ;;  %s563_s4 = inlined_call_operand.vmem [shape: f32[1,128], index: 4, kind: input, shape index: {}]   ;;  %s564_s5 = inlined_call_operand.hbm [shape: f32[8,128], index: 5, kind: output, shape index: {}]  }
   0x1   :  { %11 = vsyncpa [#allocation7], 0 }
   0x2   :  { %12 = vsyncpa [#allocation5], 0  ;;  %s503_s18 = smov [#allocation6]  }
   0x3   :  { %s28_s19 = sshll.u32 %s503_s18, 4  ;;  %s29_s19 = int_to_ptr.vmem [resolvable:$true] %s28_s19 }
   0x4   :  { %s425_s20 = scalar_lea.vmem %s29_s19, 1024  ;;  %p430_p1 = scmp.lt.s32.totalorder %s29_s19, %s29_s19 }
   0x5   :  { %p426_p0 = scmp.ne.s32.totalorder %s29_s19, %s425_s20  ;;  %p431_p2 = scmp.lt.s32.totalorder %s425_s20, %s425_s20 }
   0x7   :  { %p432_p3 = por %p431_p2, %p430_p1 }
   0x9   :  { %p433_p4 = pnand %p432_p3, %p426_p0 }
   0xb   :  { %436 = shalt.err (!%p433_p4)
}
   0xc   :  { %s504_s21 = smov 64   ;;  %s505_s22 = smov 4  }
   0xd   :  { %34 = dma.hbm_to_vmem [thread:$0]  %s560_s1, 1024, %s29_s19, [#allocation7], %s504_s21, %s504_s21, %s505_s22  }
   0xe   :  { %s506_s25 = smov [#allocation3]   ;;  %s507_s27 = smov [#allocation8]  }
   0xf   :  { %s19_s26 = sshll.u32 %s506_s25, 4  ;;  %s42_s28 = sshll.u32 %s507_s27, 4  ;;  %s20_s26 = int_to_ptr.vmem [resolvable:$true] %s19_s26  ;;  %s43_s28 = int_to_ptr.vmem [resolvable:$true] %s42_s28 }
  0x10   :  { %s445_s29 = scalar_lea.vmem %s20_s26, 64  ;;  %p450_p6 = scmp.lt.s32.totalorder %s20_s26, %s20_s26 }
  0x11   :  { %p446_p5 = scmp.ne.s32.totalorder %s20_s26, %s445_s29  ;;  %p451_p7 = scmp.lt.s32.totalorder %s445_s29, %s445_s29 }
  0x13   :  { %p452_p8 = por %p451_p7, %p450_p6 }
  0x15   :  { %p453_p9 = pnand %p452_p8, %p446_p5 }
  0x17   :  { %456 = shalt.err (!%p453_p9)
}
  0x18   :  { %22 = dma.hbm_to_vmem [thread:$0]  %s559_s0, 64, %s20_s26, [#allocation4]  }
  0x19   :  { %s465_s7 = scalar_lea.vmem %s43_s28, 1024  ;;  %p470_p11 = scmp.lt.s32.totalorder %s43_s28, %s43_s28 }
  0x1a   :  { %p466_p10 = scmp.ne.s32.totalorder %s43_s28, %s465_s7  ;;  %p471_p12 = scmp.lt.s32.totalorder %s465_s7, %s465_s7 }
  0x1c   :  { %p472_p13 = por %p471_p12, %p470_p11 }
  0x1e   :  { %p473_p0 = pnand %p472_p13, %p466_p10 }
  0x20   :  { %476 = shalt.err (!%p473_p0)
}
  0x21   :  { %48 = dma.hbm_to_vmem [thread:$0]  %s562_s3, 1024, %s43_s28, [#allocation7], %s504_s21, %s504_s21, %s505_s22  }
  0x22   :  { %497 = dma.done.wait [#allocation4], 64  }
  0x23   :  { %498 = vsyncadd [#allocation4], 4294967232 }
  0x24   :  { %499 = dma.done.wait [#allocation7], 2048  }
  0x25   :  { %500 = vsyncadd [#allocation7], 4294965248  ;;  %v508_v0 = vmov 0.0   ;;  %vm509_vm0 = vmmov 0   ;;  %v401_v1 = vld [vmem:[#allocation6 + $0x38] sm:$0xff]   ;;  %v402_v2 = vld [vmem:[#allocation6 + $0x30] sm:$0xff]  }
  0x26   :  { %353 = vmatprep.subr.bf16.mxu0 %v508_v0  ;;  %369 = vmatprep.mubr.msk.bf16.mxu0 %vm509_vm0, %v508_v0  ;;  %v403_v3 = vld [vmem:[#allocation6 + $0x28] sm:$0xff]   ;;  %v409_v4 = vld [vmem:[#allocation8 + $0x38] sm:$0xff]   ;;  %v404_v5 = vld [vmem:[#allocation6 + $0x20] sm:$0xff]   ;;  %s510_s11 = smov [#allocation9]  }
  0x27   :  { %373 = vmatprep.subr.bf16.mxu1 %v508_v0  ;;  %389 = vmatprep.mubr.msk.bf16.mxu1 %vm509_vm0, %v508_v0  ;;  %v410_v6 = vld [vmem:[#allocation8 + $0x30] sm:$0xff]   ;;  %v405_v7 = vld [vmem:[#allocation6 + $0x18] sm:$0xff]   ;;  %v411_v8 = vld [vmem:[#allocation8 + $0x28] sm:$0xff]   ;;  %s307_s12 = sshll.u32 %s510_s11, 4  ;;  %s308_s12 = int_to_ptr.vmem [resolvable:$true] %s307_s12 }
  0x28   :  { %354 = vmatpush3.bf16.msra.mxu0 %v401_v1  ;;  %374 = vmatpush3.bf16.msra.mxu1 %v409_v4  ;;  %v406_v9 = vld [vmem:[#allocation6 + $0x10] sm:$0xff]   ;;  %v412_v10 = vld [vmem:[#allocation8 + $0x20] sm:$0xff]   ;;  %v407_v11 = vld [vmem:[#allocation6 + $0x8] sm:$0xff]   ;;  %p482_p2 = scmp.lt.s32.totalorder %s308_s12, %s308_s12 }
  0x29   :  { %355 = vmatprep.subr.bf16.mxu0 %v508_v0  ;;  %375 = vmatprep.subr.bf16.mxu1 %v508_v0  ;;  %v413_v12 = vld [vmem:[#allocation8 + $0x18] sm:$0xff]   ;;  %v408_v13 = vld [vmem:[#allocation6] sm:$0xff]   ;;  %v414_v14 = vld [vmem:[#allocation8 + $0x10] sm:$0xff]  }
  0x2a   :  { %v67_v15 = vld [vmem:[#allocation3] sm:$0xf]  ;;  %v415_v16 = vld [vmem:[#allocation8 + $0x8] sm:$0xff]   ;;  %v416_v17 = vld [vmem:[#allocation8] sm:$0xff]  }
  0x2b   :  { %v325_v18 = vld [vmem:[%s561_s2] ss:$0 sm:$0xff]  ;;  %s477_s2 = scalar_lea.vmem %s308_s12, 128 }
  0x2c   :  { %356 = vmatpush3.bf16.msra.mxu0 %v402_v2  ;;  %376 = vmatpush3.bf16.msra.mxu1 %v410_v6  ;;  %v326_v26 = vld [vmem:[%s563_s4] ss:$0 sm:$0xff]  ;;  %p478_p1 = scmp.ne.s32.totalorder %s308_s12, %s477_s2  ;;  %p483_p3 = scmp.lt.s32.totalorder %s477_s2, %s477_s2 }
  0x2d   :  { %357 = vmatprep.subr.bf16.mxu0 %v508_v0  ;;  %377 = vmatprep.subr.bf16.mxu1 %v508_v0 }
  0x2e   :  { %p484_p4 = por %p483_p3, %p482_p2 }
  0x30   :  { %358 = vmatpush3.bf16.msra.mxu0 %v403_v3  ;;  %378 = vmatpush3.bf16.msra.mxu1 %v411_v8  ;;  %p485_p5 = pnand %p484_p4, %p478_p1 }
  0x31   :  { %359 = vmatprep.subr.bf16.mxu0 %v508_v0  ;;  %379 = vmatprep.subr.bf16.mxu1 %v508_v0 }
  0x34   :  { %360 = vmatpush3.bf16.msra.mxu0 %v404_v5  ;;  %380 = vmatpush3.bf16.msra.mxu1 %v412_v10 }
  0x35   :  { %361 = vmatprep.subr.bf16.mxu0 %v508_v0  ;;  %381 = vmatprep.subr.bf16.mxu1 %v508_v0 }
  0x38   :  { %362 = vmatpush3.bf16.msra.mxu0 %v405_v7  ;;  %382 = vmatpush3.bf16.msra.mxu1 %v413_v12 }
  0x39   :  { %363 = vmatprep.subr.bf16.mxu0 %v508_v0  ;;  %383 = vmatprep.subr.bf16.mxu1 %v508_v0 }
  0x3c   :  { %364 = vmatpush3.bf16.msra.mxu0 %v406_v9  ;;  %384 = vmatpush3.bf16.msra.mxu1 %v414_v14 }
  0x3d   :  { %365 = vmatprep.subr.bf16.mxu0 %v508_v0  ;;  %385 = vmatprep.subr.bf16.mxu1 %v508_v0 }
  0x40   :  { %366 = vmatpush3.bf16.msra.mxu0 %v407_v11  ;;  %386 = vmatpush3.bf16.msra.mxu1 %v415_v16 }
  0x41   :  { %367 = vmatprep.subr.bf16.mxu0 %v508_v0  ;;  %387 = vmatprep.subr.bf16.mxu1 %v508_v0 }
  0x44   :  { %368 = vmatpush3.bf16.msra.mxu0 %v408_v13  ;;  %388 = vmatpush3.bf16.msra.mxu1 %v416_v17 }
  0x47   :  { %370 = vmatmul.mubr.bf16.vlgmr.msra.gmra.mxu0 %v67_v15 }
 0x107   :  { %v166_v19 = vpop.f32.mrf.mxu0 }
 0x108   :  { %v185_v20 = vadd.f32 %v325_v18, %v166_v19 }
 0x109   :  { %v371_v21 = vpop.f32.mrf.mxu0 }
 0x10a   :  { %v186_v22 = vmax.f32 %v185_v20, 0.0 }
 0x10b   :  { %v169_v23 = vpop.f32.mrf.mxu0 }
 0x10c   :  { %v187_v24 = vpack.c.bf16 %v186_v22, %v186_v22 }
 0x10d   :  { %v372_v25 = vpop.f32.mrf.mxu0 }
 0x10e   :  { %390 = vmatmul.mubr.bf16.vlgmr.msra.gmra.mxu1 %v187_v24 }
 0x1ce   :  { %v293_v27 = vpop.f32.mrf.mxu1 }
 0x1cf   :  { %v294_v28 = vadd.f32 %v326_v26, %v293_v27 }
 0x1d0   :  { %v391_v29 = vpop.f32.mrf.mxu1 }
 0x1d1   :  { %v299_v30 = vmax.f32 %v294_v28, 0.0 }
 0x1d2   :  { %v296_v31 = vpop.f32.mrf.mxu1 }
 0x1d3   :  { %300 = vst [vmem:[#allocation9] sm:$0xff] %v299_v30 }
 0x1d4   :  { %v392_v32 = vpop.f32.mrf.mxu1 }
 0x1d5   :  { %488 = shalt.err (!%p485_p5)
}
 0x1d6   :  { %310 = dma.vmem_to_hbm [thread:$0]  %s308_s12, 128, %s564_s5, [#allocation5]  }
 0x1d7   :  { %501 = dma.done.wait [#allocation5], 128  }
 0x1d8   :  { %502 = vsyncadd [#allocation5], 4294967168 }
 0x1d9   :  { %314 = vsyncpa [#allocation4], 1 }
 0x1da   :  { %315 = vsyncpa [#allocation7], 1 }
 0x1db   :  { %316 = vsyncpa [#allocation5], 1 }

// kernel: tpu_custom_call.1
= control target key start
LH: loop header
LB: loop body
LE: loop exit
PB: predicated region body
PF: predicated region fallthrough
CT: control target
= control target key end

     0   :  { %10 = vsyncpa [#allocation4], 0  ;;  %s559_s0 = inlined_call_operand.hbm [shape: bf16[8,128], index: 0, kind: input, shape index: {}]   ;;  %s560_s1 = inlined_call_operand.hbm [shape: bf16[128,128], index: 1, kind: input, shape index: {}]   ;;  %s561_s2 = inlined_call_operand.vmem [shape: f32[1,128], index: 2, kind: input, shape index: {}]   ;;  %s562_s3 = inlined_call_operand.hbm [shape: bf16[128,128], index: 3, kind: input, shape index: {}]   ;;  %s563_s4 = inlined_call_operand.vmem [shape: f32[1,128], index: 4, kind: input, shape index: {}]   ;;  %s564_s5 = inlined_call_operand.hbm [shape: f32[8,128], index: 5, kind: output, shape index: {}]  }
   0x1   :  { %11 = vsyncpa [#allocation7], 0 }
   0x2   :  { %12 = vsyncpa [#allocation5], 0  ;;  %s503_s18 = smov [#allocation6]  }
   0x3   :  { %s28_s19 = sshll.u32 %s503_s18, 4  ;;  %s29_s19 = int_to_ptr.vmem [resolvable:$true] %s28_s19 }
   0x4   :  { %s425_s20 = scalar_lea.vmem %s29_s19, 1024  ;;  %p430_p1 = scmp.lt.s32.totalorder %s29_s19, %s29_s19 }
   0x5   :  { %p426_p0 = scmp.ne.s32.totalorder %s29_s19, %s425_s20  ;;  %p431_p2 = scmp.lt.s32.totalorder %s425_s20, %s425_s20 }
   0x7   :  { %p432_p3 = por %p431_p2, %p430_p1 }
   0x9   :  { %p433_p4 = pnand %p432_p3, %p426_p0 }
   0xb   :  { %436 = shalt.err (!%p433_p4)
}
   0xc   :  { %s504_s21 = smov 64   ;;  %s505_s22 = smov 4  }
   0xd   :  { %34 = dma.hbm_to_vmem [thread:$0]  %s560_s1, 1024, %s29_s19, [#allocation7], %s504_s21, %s504_s21, %s505_s22  }
   0xe   :  { %s506_s25 = smov [#allocation3]   ;;  %s507_s27 = smov [#allocation8]  }
   0xf   :  { %s19_s26 = sshll.u32 %s506_s25, 4  ;;  %s42_s28 = sshll.u32 %s507_s27, 4  ;;  %s20_s26 = int_to_ptr.vmem [resolvable:$true] %s19_s26  ;;  %s43_s28 = int_to_ptr.vmem [resolvable:$true] %s42_s28 }
  0x10   :  { %s445_s29 = scalar_lea.vmem %s20_s26, 64  ;;  %p450_p6 = scmp.lt.s32.totalorder %s20_s26, %s20_s26 }
  0x11   :  { %p446_p5 = scmp.ne.s32.totalorder %s20_s26, %s445_s29  ;;  %p451_p7 = scmp.lt.s32.totalorder %s445_s29, %s445_s29 }
  0x13   :  { %p452_p8 = por %p451_p7, %p450_p6 }
  0x15   :  { %p453_p9 = pnand %p452_p8, %p446_p5 }
  0x17   :  { %456 = shalt.err (!%p453_p9)
}
  0x18   :  { %22 = dma.hbm_to_vmem [thread:$0]  %s559_s0, 64, %s20_s26, [#allocation4]  }
  0x19   :  { %s465_s7 = scalar_lea.vmem %s43_s28, 1024  ;;  %p470_p11 = scmp.lt.s32.totalorder %s43_s28, %s43_s28 }
  0x1a   :  { %p466_p10 = scmp.ne.s32.totalorder %s43_s28, %s465_s7  ;;  %p471_p12 = scmp.lt.s32.totalorder %s465_s7, %s465_s7 }
  0x1c   :  { %p472_p13 = por %p471_p12, %p470_p11 }
  0x1e   :  { %p473_p0 = pnand %p472_p13, %p466_p10 }
  0x20   :  { %476 = shalt.err (!%p473_p0)
}
  0x21   :  { %48 = dma.hbm_to_vmem [thread:$0]  %s562_s3, 1024, %s43_s28, [#allocation7], %s504_s21, %s504_s21, %s505_s22  }
  0x22   :  { %497 = dma.done.wait [#allocation4], 64  }
  0x23   :  { %498 = vsyncadd [#allocation4], 4294967232 }
  0x24   :  { %499 = dma.done.wait [#allocation7], 2048  }
  0x25   :  { %500 = vsyncadd [#allocation7], 4294965248  ;;  %v508_v0 = vmov 0.0   ;;  %vm509_vm0 = vmmov 0   ;;  %v401_v1 = vld [vmem:[#allocation6 + $0x38] sm:$0xff]   ;;  %v402_v2 = vld [vmem:[#allocation6 + $0x30] sm:$0xff]  }
  0x26   :  { %353 = vmatprep.subr.bf16.mxu0 %v508_v0  ;;  %369 = vmatprep.mubr.msk.bf16.mxu0 %vm509_vm0, %v508_v0  ;;  %v403_v3 = vld [vmem:[#allocation6 + $0x28] sm:$0xff]   ;;  %v409_v4 = vld [vmem:[#allocation8 + $0x38] sm:$0xff]   ;;  %v404_v5 = vld [vmem:[#allocation6 + $0x20] sm:$0xff]   ;;  %s510_s11 = smov [#allocation9]  }
  0x27   :  { %373 = vmatprep.subr.bf16.mxu1 %v508_v0  ;;  %389 = vmatprep.mubr.msk.bf16.mxu1 %vm509_vm0, %v508_v0  ;;  %v410_v6 = vld [vmem:[#allocation8 + $0x30] sm:$0xff]   ;;  %v405_v7 = vld [vmem:[#allocation6 + $0x18] sm:$0xff]   ;;  %v411_v8 = vld [vmem:[#allocation8 + $0x28] sm:$0xff]   ;;  %s307_s12 = sshll.u32 %s510_s11, 4  ;;  %s308_s12 = int_to_ptr.vmem [resolvable:$true] %s307_s12 }
  0x28   :  { %354 = vmatpush3.bf16.msra.mxu0 %v401_v1  ;;  %374 = vmatpush3.bf16.msra.mxu1 %v409_v4  ;;  %v406_v9 = vld [vmem:[#allocation6 + $0x10] sm:$0xff]   ;;  %v412_v10 = vld [vmem:[#allocation8 + $0x20] sm:$0xff]   ;;  %v407_v11 = vld [vmem:[#allocation6 + $0x8] sm:$0xff]   ;;  %p482_p2 = scmp.lt.s32.totalorder %s308_s12, %s308_s12 }
  0x29   :  { %355 = vmatprep.subr.bf16.mxu0 %v508_v0  ;;  %375 = vmatprep.subr.bf16.mxu1 %v508_v0  ;;  %v413_v12 = vld [vmem:[#allocation8 + $0x18] sm:$0xff]   ;;  %v408_v13 = vld [vmem:[#allocation6] sm:$0xff]   ;;  %v414_v14 = vld [vmem:[#allocation8 + $0x10] sm:$0xff]  }
  0x2a   :  { %v67_v15 = vld [vmem:[#allocation3] sm:$0xf]  ;;  %v415_v16 = vld [vmem:[#allocation8 + $0x8] sm:$0xff]   ;;  %v416_v17 = vld [vmem:[#allocation8] sm:$0xff]  }
  0x2b   :  { %v325_v18 = vld [vmem:[%s561_s2] ss:$0 sm:$0xff]  ;;  %s477_s2 = scalar_lea.vmem %s308_s12, 128 }
  0x2c   :  { %356 = vmatpush3.bf16.msra.mxu0 %v402_v2  ;;  %376 = vmatpush3.bf16.msra.mxu1 %v410_v6  ;;  %v326_v26 = vld [vmem:[%s563_s4] ss:$0 sm:$0xff]  ;;  %p478_p1 = scmp.ne.s32.totalorder %s308_s12, %s477_s2  ;;  %p483_p3 = scmp.lt.s32.totalorder %s477_s2, %s477_s2 }
  0x2d   :  { %357 = vmatprep.subr.bf16.mxu0 %v508_v0  ;;  %377 = vmatprep.subr.bf16.mxu1 %v508_v0 }
  0x2e   :  { %p484_p4 = por %p483_p3, %p482_p2 }
  0x30   :  { %358 = vmatpush3.bf16.msra.mxu0 %v403_v3  ;;  %378 = vmatpush3.bf16.msra.mxu1 %v411_v8  ;;  %p485_p5 = pnand %p484_p4, %p478_p1 }
  0x31   :  { %359 = vmatprep.subr.bf16.mxu0 %v508_v0  ;;  %379 = vmatprep.subr.bf16.mxu1 %v508_v0 }
  0x34   :  { %360 = vmatpush3.bf16.msra.mxu0 %v404_v5  ;;  %380 = vmatpush3.bf16.msra.mxu1 %v412_v10 }
  0x35   :  { %361 = vmatprep.subr.bf16.mxu0 %v508_v0  ;;  %381 = vmatprep.subr.bf16.mxu1 %v508_v0 }
  0x38   :  { %362 = vmatpush3.bf16.msra.mxu0 %v405_v7  ;;  %382 = vmatpush3.bf16.msra.mxu1 %v413_v12 }
  0x39   :  { %363 = vmatprep.subr.bf16.mxu0 %v508_v0  ;;  %383 = vmatprep.subr.bf16.mxu1 %v508_v0 }
  0x3c   :  { %364 = vmatpush3.bf16.msra.mxu0 %v406_v9  ;;  %384 = vmatpush3.bf16.msra.mxu1 %v414_v14 }
  0x3d   :  { %365 = vmatprep.subr.bf16.mxu0 %v508_v0  ;;  %385 = vmatprep.subr.bf16.mxu1 %v508_v0 }
  0x40   :  { %366 = vmatpush3.bf16.msra.mxu0 %v407_v11  ;;  %386 = vmatpush3.bf16.msra.mxu1 %v415_v16 }
  0x41   :  { %367 = vmatprep.subr.bf16.mxu0 %v508_v0  ;;  %387 = vmatprep.subr.bf16.mxu1 %v508_v0 }
  0x44   :  { %368 = vmatpush3.bf16.msra.mxu0 %v408_v13  ;;  %388 = vmatpush3.bf16.msra.mxu1 %v416_v17 }
  0x47   :  { %370 = vmatmul.mubr.bf16.vlgmr.msra.gmra.mxu0 %v67_v15 }
 0x107   :  { %v166_v19 = vpop.f32.mrf.mxu0 }
 0x108   :  { %v185_v20 = vadd.f32 %v325_v18, %v166_v19 }
 0x109   :  { %v371_v21 = vpop.f32.mrf.mxu0 }
 0x10a   :  { %v186_v22 = vmax.f32 %v185_v20, 0.0 }
 0x10b   :  { %v169_v23 = vpop.f32.mrf.mxu0 }
 0x10c   :  { %v187_v24 = vpack.c.bf16 %v186_v22, %v186_v22 }
 0x10d   :  { %v372_v25 = vpop.f32.mrf.mxu0 }
 0x10e   :  { %390 = vmatmul.mubr.bf16.vlgmr.msra.gmra.mxu1 %v187_v24 }
 0x1ce   :  { %v293_v27 = vpop.f32.mrf.mxu1 }
 0x1cf   :  { %v294_v28 = vadd.f32 %v326_v26, %v293_v27 }
 0x1d0   :  { %v391_v29 = vpop.f32.mrf.mxu1 }
 0x1d1   :  { %v299_v30 = vmax.f32 %v294_v28, 0.0 }
 0x1d2   :  { %v296_v31 = vpop.f32.mrf.mxu1 }
 0x1d3   :  { %300 = vst [vmem:[#allocation9] sm:$0xff] %v299_v30 }
 0x1d4   :  { %v392_v32 = vpop.f32.mrf.mxu1 }
 0x1d5   :  { %488 = shalt.err (!%p485_p5)
}
 0x1d6   :  { %310 = dma.vmem_to_hbm [thread:$0]  %s308_s12, 128, %s564_s5, [#allocation5]  }
 0x1d7   :  { %501 = dma.done.wait [#allocation5], 128  }
 0x1d8   :  { %502 = vsyncadd [#allocation5], 4294967168 }
 0x1d9   :  { %314 = vsyncpa [#allocation4], 1 }
 0x1da   :  { %315 = vsyncpa [#allocation7], 1 }
 0x1db   :  { %316 = vsyncpa [#allocation5], 1 }

</bundles_post_ra>
